<compile_context>
chip_gen: v7x
topology: tpu7x:2x2x1
jax: 0.10.0
libtpu: 0.0.40
codegen_flags: <defaults>
</compile_context>

<pallas_src>
import functools
import math

import jax
import jax.numpy as jnp
from jax.experimental import pallas as pl
from jax.experimental.pallas import tpu as pltpu

_NEG_CAP = -1e30  # large-negative (finite) fill so masked lanes never NaN


def _temperature_loss_kernel(temp_ref, adv_col_ref, adv_row_ref, out_ref,
                             ones_ref, rank_ref,
                             *, k, tile_i, tile_j):
    i = pl.program_id(0)            # i-chunk (rows of the rank matrix)
    j = pl.program_id(1)            # j-chunk (reduction axis, innermost)
    nj = pl.num_programs(1)

    # ---- new i-chunk: (re)build constant MXU RHS, reset rank accumulator --
    @pl.when(j == 0)
    def _():
        ones_ref[...] = jnp.ones((tile_j, 128), jnp.bfloat16)
        rank_ref[...] = jnp.zeros((tile_i, 128), jnp.float32)

    a_i_col = adv_col_ref[...]                                      # (TI, 1)
    a_j_row = adv_row_ref[...]                                      # (1, TJ)

    # ---- tie-break specialization: classify this (i, j) tile pair ---------
    # left  : every j index <  every i index  -> tie-break always true
    # right : every j index >= every i index  -> tie-break always false
    left = (j + 1) * tile_j <= i * tile_i
    right = j * tile_j >= (i + 1) * tile_i - 1
    diag = jnp.logical_not(left | right)

    def _acc(beats_bool):
        beats = beats_bool.astype(jnp.bfloat16)                    # (TI, TJ)
        rank_ref[...] += jnp.dot(beats, ones_ref[...],
                                 preferred_element_type=jnp.float32)

    @pl.when(left)
    def _():
        _acc(a_j_row >= a_i_col)

    @pl.when(right)
    def _():
        _acc(a_j_row > a_i_col)

    @pl.when(diag)
    def _():
        i_ids = i * tile_i + jax.lax.broadcasted_iota(jnp.int32, (tile_i, 1), 0)
        j_ids = j * tile_j + jax.lax.broadcasted_iota(jnp.int32, (1, tile_j), 1)
        _acc((a_j_row > a_i_col)
             | ((a_j_row == a_i_col) & (j_ids < i_ids)))

    # ---- ranks for this i-chunk complete: emit partial masked logsumexp ---
    @pl.when(j == nj - 1)
    def _():
        t = temp_ref[0]                                             # SMEM f32
        rank0 = rank_ref[:, 0:1]                                    # (TI, 1)
        in_topk = rank0 < jnp.float32(k)
        ratio = a_i_col / (t + jnp.float32(0.001))                  # (TI, 1)
        masked = jnp.where(in_topk, ratio, jnp.float32(_NEG_CAP))
        m = jnp.max(masked, axis=0, keepdims=True)                  # (1, 1)
        # select (not multiply) so inf from masked-out lanes is discarded
        p = jnp.where(in_topk, jnp.exp(ratio - m), jnp.float32(0.0))
        s = jnp.sum(p, axis=0, keepdims=True)
        lse_chunk = m + jnp.log(s)            # -inf if no element selected
        out_ref[...] = jnp.broadcast_to(lse_chunk.reshape(1, 1, 1), (1, 8, 128))


def temperature_loss(temperature, advantages, coef_temp: float = 1e-4):
    """Pallas TPU implementation of TemperatureLoss.forward."""
    adv = jnp.asarray(advantages, jnp.float32).reshape(-1)
    n = int(adv.shape[0])
    k = int(math.ceil(n / 2))

    # ---- tiling: N <= 1024 -> single grid step; else (512, 1024) tiles ----
    lane = 128
    n_pad_min = max(lane, ((n + lane - 1) // lane) * lane)
    if n_pad_min <= 1024:
        ti = tj = n_pad = n_pad_min
    else:
        ti, tj = 512, 1024
        n_pad = ((n + tj - 1) // tj) * tj      # multiple of both ti and tj

    # pad with -inf so padded elements can never enter the top-k
    adv_pad = jnp.pad(adv, (0, n_pad - n), constant_values=-jnp.inf)
    adv_row = adv_pad.reshape(1, n_pad)        # lane-dense j operand
    adv_col = adv_pad.reshape(n_pad, 1)        # sublane-major i operand
    temp = jnp.asarray(temperature, jnp.float32).reshape(-1)[:1]    # (1,)

    ni, nj = n_pad // ti, n_pad // tj

    kernel = functools.partial(_temperature_loss_kernel, k=k,
                               tile_i=ti, tile_j=tj)

    out = pl.pallas_call(
        kernel,
        out_shape=jax.ShapeDtypeStruct((ni, 8, 128), jnp.float32),
        grid=(ni, nj),
        in_specs=[
            pl.BlockSpec(memory_space=pltpu.MemorySpace.SMEM),       # temperature
            pl.BlockSpec((ti, 1), lambda i, j: (i, 0)),              # a_i column
            pl.BlockSpec((1, tj), lambda i, j: (0, j)),              # a_j row
        ],
        out_specs=pl.BlockSpec((1, 8, 128), lambda i, j: (i, 0, 0)), # per-chunk lse
        scratch_shapes=[
            pltpu.VMEM((tj, 128), jnp.bfloat16),   # constant MXU RHS (ones)
            pltpu.VMEM((ti, 128), jnp.float32),    # lane-dense rank accumulator
        ],
        compiler_params=pltpu.CompilerParams(
            dimension_semantics=("parallel", "arbitrary"),
            vmem_limit_bytes=32 * 1024 * 1024,
        ),
    )(temp, adv_col, adv_row)

    # Tiny scalar epilogue: combine per-chunk partial logsumexp + final loss.
    chunk_lse = out[:, 0, 0]                                         # (ni,)
    m_max = jnp.max(chunk_lse)
    lse = m_max + jnp.log(jnp.sum(jnp.exp(chunk_lse - m_max)))
    t = temp[0]
    return t * jnp.float32(coef_temp) + t * (lse - jnp.log(jnp.float32(k)))


def _reference(temperature, advantages, coef_temp: float = 1e-4):
    """Pure-JAX reference mirroring the PyTorch code, for verification."""
    adv = jnp.asarray(advantages, jnp.float32).reshape(-1)
    k = int(math.ceil(adv.shape[0] / 2))
    top_adv = jax.lax.top_k(adv, k)[0]
    t = jnp.asarray(temperature, jnp.float32).reshape(-1)[0]
    ratio = top_adv / (t + 0.001)
    m = jnp.max(ratio)
    lse = m + jnp.log(jnp.sum(jnp.exp(ratio - m)))
    return t * coef_temp + t * (lse - jnp.log(jnp.float32(k)))


if __name__ == "__main__":
    key = jax.random.PRNGKey(0)
    k_adv, k_temp, k_adv2, k_adv3 = jax.random.split(key, 4)

    # Shapes implied by the forward: advantages [N, 1] (topk over dim 0),
    # temperature a scalar/[1] tensor.
    temperature = jnp.abs(jax.random.normal(k_temp, (1,), dtype=jnp.float32)) + 0.5

    # Small case: single grid step.
    adv1 = jax.random.normal(k_adv, (8, 1), dtype=jnp.float32)
    out1 = jax.block_until_ready(temperature_loss(temperature, adv1))
    ref1 = _reference(temperature, adv1)
    assert jnp.allclose(out1, ref1, atol=1e-3, rtol=1e-3), (out1, ref1)

    # Padded single-tile path (N not a multiple of 128).
    adv2 = jax.random.normal(k_adv2, (600, 1), dtype=jnp.float32)
    out2 = jax.block_until_ready(temperature_loss(temperature, adv2))
    ref2 = _reference(temperature, adv2)
    assert jnp.allclose(out2, ref2, atol=1e-3, rtol=1e-3), (out2, ref2)

    # Multi-chunk grid path with many tied values: exercises the tiled rank
    # accumulation, tie-break specialization, padding and the per-chunk
    # partial-logsumexp combine.
    adv3 = jnp.round(jax.random.normal(k_adv3, (3000, 1), dtype=jnp.float32) * 4.0) / 4.0
    out3 = jax.block_until_ready(temperature_loss(temperature, adv3))
    ref3 = _reference(temperature, adv3)
    assert jnp.allclose(out3, ref3, atol=1e-3, rtol=1e-3), (out3, ref3)

    print("KERNEL_OK")
</pallas_src>

<mosaic_0001>
module attributes {stable_mosaic.version = 11 : i64} {
  func.func @_temperature_loss_kernel(%arg0: i32, %arg1: i32, %arg2: memref<1xf32, #tpu.memory_space<smem>>, %arg3: memref<128x1xf32, #tpu.memory_space<vmem>>, %arg4: memref<1x128xf32, #tpu.memory_space<vmem>>, %arg5: memref<1x8x128xf32, #tpu.memory_space<vmem>>, %arg6: memref<128x128xbf16, #tpu.memory_space<vmem>>, %arg7: memref<128x128xf32, #tpu.memory_space<vmem>>) attributes {dimension_semantics = [#tpu.dimension_semantics<parallel>, #tpu.dimension_semantics<arbitrary>], iteration_bounds = array<i64: 1, 1>, scalar_prefetch = 0 : i64, scratch_operands = 2 : i64, tpu.core_type = #tpu.core_type<tc>, window_params = [{transform_indices = @transform_0, window_bounds = array<i64: 1>}, {transform_indices = @transform_1, window_bounds = array<i64: 128, 1>}, {transform_indices = @transform_2, window_bounds = array<i64: 1, 128>}, {transform_indices = @transform_3, window_bounds = array<i64: 1, 8, 128>}]} {
    %c0_i32 = arith.constant 0 : i32
    %0 = arith.cmpi eq, %arg1, %c0_i32 : i32
    %1 = arith.extui %0 : i1 to i32
    %c0_i32_0 = arith.constant 0 : i32
    %2 = arith.cmpi ne, %1, %c0_i32_0 : i32
    scf.if %2 {
      %cst = arith.constant 1.000000e+00 : bf16
      %25 = vector.broadcast %cst : bf16 to vector<128x128xbf16>
      %c0_14 = arith.constant 0 : index
      %c0_15 = arith.constant 0 : index
      %26 = vector.load %arg6[%c0_14, %c0_15] : memref<128x128xbf16, #tpu.memory_space<vmem>>, vector<128x128xbf16>
      tpu.vector_store %arg6[%c0_14, %c0_15], %25 {strides = array<i32>} : memref<128x128xbf16, #tpu.memory_space<vmem>>, vector<128x128xbf16>,
      %cst_16 = arith.constant 0.000000e+00 : f32
      %27 = vector.broadcast %cst_16 : f32 to vector<128x128xf32>
      %c0_17 = arith.constant 0 : index
      %c0_18 = arith.constant 0 : index
      %28 = vector.load %arg7[%c0_17, %c0_18] : memref<128x128xf32, #tpu.memory_space<vmem>>, vector<128x128xf32>
      tpu.vector_store %arg7[%c0_17, %c0_18], %27 {strides = array<i32>} : memref<128x128xf32, #tpu.memory_space<vmem>>, vector<128x128xf32>,
    } else {
    }
    %c0 = arith.constant 0 : index
    %c0_1 = arith.constant 0 : index
    %3 = vector.load %arg3[%c0, %c0_1] : memref<128x1xf32, #tpu.memory_space<vmem>>, vector<128x1xf32>
    %c0_2 = arith.constant 0 : index
    %c0_3 = arith.constant 0 : index
    %4 = vector.load %arg4[%c0_2, %c0_3] : memref<1x128xf32, #tpu.memory_space<vmem>>, vector<1x128xf32>
    %c1_i32 = arith.constant 1 : i32
    %5 = arith.addi %arg1, %c1_i32 : i32
    %c128_i32 = arith.constant 128 : i32
    %6 = arith.muli %5, %c128_i32 : i32
    %c128_i32_4 = arith.constant 128 : i32
    %7 = arith.muli %arg0, %c128_i32_4 : i32
    %8 = arith.cmpi sle, %6, %7 : i32
    %c128_i32_5 = arith.constant 128 : i32
    %9 = arith.muli %arg1, %c128_i32_5 : i32
    %c1_i32_6 = arith.constant 1 : i32
    %10 = arith.addi %arg0, %c1_i32_6 : i32
    %c128_i32_7 = arith.constant 128 : i32
    %11 = arith.muli %10, %c128_i32_7 : i32
    %c1_i32_8 = arith.constant 1 : i32
    %12 = arith.subi %11, %c1_i32_8 : i32
    %13 = arith.cmpi sge, %9, %12 : i32
    %14 = arith.ori %8, %13 : i1
    %true = arith.constant true
    %15 = arith.xori %14, %true : i1
    %16 = arith.extui %8 : i1 to i32
    %c0_i32_9 = arith.constant 0 : i32
    %17 = arith.cmpi ne, %16, %c0_i32_9 : i32
    scf.if %17 {
      %25 = vector.broadcast %4 : vector<1x128xf32> to vector<128x128xf32>
      %26 = vector.broadcast %3 : vector<128x1xf32> to vector<128x128xf32>
      %27 = arith.cmpf oge, %25, %26 : vector<128x128xf32>
      %28 = arith.extui %27 : vector<128x128xi1> to vector<128x128xi32>
      %29 = arith.sitofp %28 : vector<128x128xi32> to vector<128x128xf32>
      %30 = arith.truncf %29 : vector<128x128xf32> to vector<128x128xbf16>
      %c0_14 = arith.constant 0 : index
      %c0_15 = arith.constant 0 : index
      %31 = vector.load %arg7[%c0_14, %c0_15] : memref<128x128xf32, #tpu.memory_space<vmem>>, vector<128x128xf32>
      %c0_16 = arith.constant 0 : index
      %c0_17 = arith.constant 0 : index
      %32 = vector.load %arg6[%c0_16, %c0_17] : memref<128x128xbf16, #tpu.memory_space<vmem>>, vector<128x128xbf16>
      %cst = arith.constant dense<0.000000e+00> : vector<128x128xf32>
      %33 = tpu.matmul %30, %32, %cst {dimension_numbers = #tpu.dot_dimension_numbers<[1], [0], [0], [1], [0, 0, 1, 1], [], []>} : vector<128x128xbf16>, vector<128x128xbf16>, vector<128x128xf32> -> vector<128x128xf32>
      %34 = arith.addf %31, %33 : vector<128x128xf32>
      %c0_18 = arith.constant 0 : index
      %c0_19 = arith.constant 0 : index
      %35 = vector.load %arg7[%c0_18, %c0_19] : memref<128x128xf32, #tpu.memory_space<vmem>>, vector<128x128xf32>
      tpu.vector_store %arg7[%c0_18, %c0_19], %34 {strides = array<i32>} : memref<128x128xf32, #tpu.memory_space<vmem>>, vector<128x128xf32>,
    } else {
    }
    %18 = arith.extui %13 : i1 to i32
    %c0_i32_10 = arith.constant 0 : i32
    %19 = arith.cmpi ne, %18, %c0_i32_10 : i32
    scf.if %19 {
      %25 = vector.broadcast %4 : vector<1x128xf32> to vector<128x128xf32>
      %26 = vector.broadcast %3 : vector<128x1xf32> to vector<128x128xf32>
      %27 = arith.cmpf ogt, %25, %26 : vector<128x128xf32>
      %28 = arith.extui %27 : vector<128x128xi1> to vector<128x128xi32>
      %29 = arith.sitofp %28 : vector<128x128xi32> to vector<128x128xf32>
      %30 = arith.truncf %29 : vector<128x128xf32> to vector<128x128xbf16>
      %c0_14 = arith.constant 0 : index
      %c0_15 = arith.constant 0 : index
      %31 = vector.load %arg7[%c0_14, %c0_15] : memref<128x128xf32, #tpu.memory_space<vmem>>, vector<128x128xf32>
      %c0_16 = arith.constant 0 : index
      %c0_17 = arith.constant 0 : index
      %32 = vector.load %arg6[%c0_16, %c0_17] : memref<128x128xbf16, #tpu.memory_space<vmem>>, vector<128x128xbf16>
      %cst = arith.constant dense<0.000000e+00> : vector<128x128xf32>
      %33 = tpu.matmul %30, %32, %cst {dimension_numbers = #tpu.dot_dimension_numbers<[1], [0], [0], [1], [0, 0, 1, 1], [], []>} : vector<128x128xbf16>, vector<128x128xbf16>, vector<128x128xf32> -> vector<128x128xf32>
      %34 = arith.addf %31, %33 : vector<128x128xf32>
      %c0_18 = arith.constant 0 : index
      %c0_19 = arith.constant 0 : index
      %35 = vector.load %arg7[%c0_18, %c0_19] : memref<128x128xf32, #tpu.memory_space<vmem>>, vector<128x128xf32>
      tpu.vector_store %arg7[%c0_18, %c0_19], %34 {strides = array<i32>} : memref<128x128xf32, #tpu.memory_space<vmem>>, vector<128x128xf32>,
    } else {
    }
    %20 = arith.extui %15 : i1 to i32
    %c0_i32_11 = arith.constant 0 : i32
    %21 = arith.cmpi ne, %20, %c0_i32_11 : i32
    scf.if %21 {
      %c128_i32_14 = arith.constant 128 : i32
      %25 = arith.muli %arg0, %c128_i32_14 : i32
      %26 = tpu.iota {dimensions = array<i32: 0>} : vector<128x1xi32>
      %27 = vector.broadcast %25 : i32 to vector<128x1xi32>
      %28 = arith.addi %27, %26 : vector<128x1xi32>
      %c128_i32_15 = arith.constant 128 : i32
      %29 = arith.muli %arg1, %c128_i32_15 : i32
      %30 = tpu.iota {dimensions = array<i32: 1>} : vector<1x128xi32>
      %31 = vector.broadcast %29 : i32 to vector<1x128xi32>
      %32 = arith.addi %31, %30 : vector<1x128xi32>
      %33 = vector.broadcast %4 : vector<1x128xf32> to vector<128x128xf32>
      %34 = vector.broadcast %3 : vector<128x1xf32> to vector<128x128xf32>
      %35 = arith.cmpf ogt, %33, %34 : vector<128x128xf32>
      %36 = vector.broadcast %4 : vector<1x128xf32> to vector<128x128xf32>
      %37 = vector.broadcast %3 : vector<128x1xf32> to vector<128x128xf32>
      %38 = arith.cmpf oeq, %36, %37 : vector<128x128xf32>
      %39 = vector.broadcast %32 : vector<1x128xi32> to vector<128x128xi32>
      %40 = vector.broadcast %28 : vector<128x1xi32> to vector<128x128xi32>
      %41 = arith.cmpi slt, %39, %40 : vector<128x128xi32>
      %42 = arith.andi %38, %41 : vector<128x128xi1>
      %43 = arith.ori %35, %42 : vector<128x128xi1>
      %44 = arith.extui %43 : vector<128x128xi1> to vector<128x128xi32>
      %45 = arith.sitofp %44 : vector<128x128xi32> to vector<128x128xf32>
      %46 = arith.truncf %45 : vector<128x128xf32> to vector<128x128xbf16>
      %c0_16 = arith.constant 0 : index
      %c0_17 = arith.constant 0 : index
      %47 = vector.load %arg7[%c0_16, %c0_17] : memref<128x128xf32, #tpu.memory_space<vmem>>, vector<128x128xf32>
      %c0_18 = arith.constant 0 : index
      %c0_19 = arith.constant 0 : index
      %48 = vector.load %arg6[%c0_18, %c0_19] : memref<128x128xbf16, #tpu.memory_space<vmem>>, vector<128x128xbf16>
      %cst = arith.constant dense<0.000000e+00> : vector<128x128xf32>
      %49 = tpu.matmul %46, %48, %cst {dimension_numbers = #tpu.dot_dimension_numbers<[1], [0], [0], [1], [0, 0, 1, 1], [], []>} : vector<128x128xbf16>, vector<128x128xbf16>, vector<128x128xf32> -> vector<128x128xf32>
      %50 = arith.addf %47, %49 : vector<128x128xf32>
      %c0_20 = arith.constant 0 : index
      %c0_21 = arith.constant 0 : index
      %51 = vector.load %arg7[%c0_20, %c0_21] : memref<128x128xf32, #tpu.memory_space<vmem>>, vector<128x128xf32>
      tpu.vector_store %arg7[%c0_20, %c0_21], %50 {strides = array<i32>} : memref<128x128xf32, #tpu.memory_space<vmem>>, vector<128x128xf32>,
    } else {
    }
    %c0_i32_12 = arith.constant 0 : i32
    %22 = arith.cmpi eq, %arg1, %c0_i32_12 : i32
    %23 = arith.extui %22 : i1 to i32
    %c0_i32_13 = arith.constant 0 : i32
    %24 = arith.cmpi ne, %23, %c0_i32_13 : i32
    scf.if %24 {
      %c0_14 = arith.constant 0 : index
      %25 = memref.load %arg2[%c0_14] : memref<1xf32, #tpu.memory_space<smem>>
      %c0_15 = arith.constant 0 : index
      %c0_16 = arith.constant 0 : index
      %26 = vector.load %arg7[%c0_15, %c0_16] : memref<128x128xf32, #tpu.memory_space<vmem>>, vector<128x1xf32>
      %cst = arith.constant 4.000000e+00 : f32
      %27 = vector.broadcast %cst : f32 to vector<128x1xf32>
      %28 = arith.cmpf olt, %26, %27 : vector<128x1xf32>
      %cst_17 = arith.constant 1.000000e-03 : f32
      %29 = arith.addf %25, %cst_17 : f32
      %30 = vector.broadcast %29 : f32 to vector<128x1xf32>
      %31 = arith.divf %3, %30 : vector<128x1xf32>
      %cst_18 = arith.constant -1.000000e+30 : f32
      %32 = vector.broadcast %cst_18 : f32 to vector<128x1xf32>
      %33 = arith.select %28, %31, %32 : vector<128x1xi1>, vector<128x1xf32>
      %cst_19 = arith.constant dense<0xFF800000> : vector<1xf32>
      %34 = vector.multi_reduction <maximumf>, %33, %cst_19 [0] : vector<128x1xf32> to vector<1xf32>
      %35 = vector.shape_cast %34 : vector<1xf32> to vector<1x1xf32>
      %36 = vector.broadcast %35 : vector<1x1xf32> to vector<128x1xf32>
      %37 = arith.subf %31, %36 : vector<128x1xf32>
      %38 = math.exp %37 : vector<128x1xf32>
      %cst_20 = arith.constant 0.000000e+00 : f32
      %39 = vector.broadcast %cst_20 : f32 to vector<128x1xf32>
      %40 = arith.select %28, %38, %39 : vector<128x1xi1>, vector<128x1xf32>
      %cst_21 = arith.constant dense<0.000000e+00> : vector<1xf32>
      %41 = vector.multi_reduction <add>, %40, %cst_21 [0] : vector<128x1xf32> to vector<1xf32>
      %42 = vector.shape_cast %41 : vector<1xf32> to vector<1x1xf32>
      %43 = math.log %42 : vector<1x1xf32>
      %44 = arith.addf %35, %43 : vector<1x1xf32>
      %45 = vector.shape_cast %44 : vector<1x1xf32> to vector<1x1x1xf32>
      %46 = vector.shape_cast %45 : vector<1x1x1xf32> to vector<1x1x1xf32>
      %47 = vector.broadcast %46 : vector<1x1x1xf32> to vector<1x8x128xf32>
      %c0_22 = arith.constant 0 : index
      %c0_23 = arith.constant 0 : index
      %c0_24 = arith.constant 0 : index
      %48 = vector.load %arg5[%c0_22, %c0_23, %c0_24] : memref<1x8x128xf32, #tpu.memory_space<vmem>>, vector<1x8x128xf32>
      tpu.vector_store %arg5[%c0_22, %c0_23, %c0_24], %47 {strides = array<i32>} : memref<1x8x128xf32, #tpu.memory_space<vmem>>, vector<1x8x128xf32>,
    } else {
    }
    return
  }
  func.func @transform_0(%arg0: i32, %arg1: i32) -> i32 {
    %c0_i32 = arith.constant 0 : i32
    %c0_i32_0 = arith.constant 0 : i32
    return %c0_i32 : i32
  }
  func.func @transform_1(%arg0: i32, %arg1: i32) -> (i32, i32) {
    %c0_i32 = arith.constant 0 : i32
    %c0_i32_0 = arith.constant 0 : i32
    return %arg0, %c0_i32 : i32, i32
  }
  func.func @transform_2(%arg0: i32, %arg1: i32) -> (i32, i32) {
    %c0_i32 = arith.constant 0 : i32
    %c0_i32_0 = arith.constant 0 : i32
    return %c0_i32, %arg1 : i32, i32
  }
  func.func @transform_3(%arg0: i32, %arg1: i32) -> (i32, i32, i32) {
    %c0_i32 = arith.constant 0 : i32
    %c0_i32_0 = arith.constant 0 : i32
    %c0_i32_1 = arith.constant 0 : i32
    return %arg0, %c0_i32, %c0_i32_0 : i32, i32, i32
  }
}

</mosaic_0001>

<bundles_post_ra>
// kernel: tpu_custom_call.1
= control target key start
LH: loop header
LB: loop body
LE: loop exit
PB: predicated region body
PF: predicated region fallthrough
CT: control target
= control target key end

     0   :  { %v1529_v2 = vmov 0   ;;  %v1530_v5 = vmov 1065369472   ;;  %s2060_s0 = inlined_call_operand.<no memory space> [shape: f32[1], index: 0, kind: input, shape index: {}]   ;;  %s2061_s1 = inlined_call_operand.vmem [shape: f32[128,1], index: 1, kind: input, shape index: {}]   ;;  %s2062_s2 = inlined_call_operand.vmem [shape: f32[1,128], index: 2, kind: input, shape index: {}]   ;;  %s2063_s3 = inlined_call_operand.hbm [shape: f32[1,8,128], index: 3, kind: output, shape index: {}]  }
   0x1   :  { %v1556_v0 = vld [vmem:[%s2061_s1 + $0x10] sm:$0xff]  ;;  %v1561_v1 = vld [vmem:[%s2061_s1] sm:$0xff]  ;;  %1468 = vset.pattern.permute.xlu1 %v1529_v2  ;;  %1467 = vset.pattern.permute.xlu0 %v1529_v2  ;;  %v1568_v3 = vld [vmem:[%s2061_s1 + $0x18] sm:$0xff] }
   0x2   :  { %728 = vperm.xlu1 %1468, %v1556_v0   ;;  %718 = vperm.xlu0 %1467, %v1561_v1   ;;  %v1573_v4 = vld [vmem:[%s2061_s1 + $0x8] sm:$0xff] }
   0x3   :  { %1415 = vmatprep.subr.bf16.mxu0 %v1530_v5  ;;  %1447 = vmatprep.subr.bf16.mxu1 %v1530_v5 }
   0x4   :  { %1416 = vmatpush3.bf16.msra.mxu0 %v1530_v5  ;;  %1455 = vmatpush3.bf16.msra.mxu1 %v1530_v5 }
   0x5   :  { %1417 = vmatprep.subr.bf16.mxu0 %v1530_v5  ;;  %1448 = vmatprep.subr.bf16.mxu1 %v1530_v5 }
   0x6   :  { %9 = vsyncpa [#allocation6], 0  ;;  %733 = vperm.xlu1 %1468, %v1568_v3   ;;  %723 = vperm.xlu0 %1467, %v1573_v4   ;;  %v1580_v6 = vld [vmem:[%s2061_s1 + $0x48] sm:$0xff]  ;;  %v1585_v7 = vld [vmem:[%s2061_s1 + $0x40] sm:$0xff]  ;;  %v672_v18 = vlaneseq  ;;  %v1531_v38 = vmov 1.0|1.0  }
   0x7   :  { %v1592_v8 = vld [vmem:[%s2061_s1 + $0x58] sm:$0xff]  ;;  %v1597_v9 = vld [vmem:[%s2061_s1 + $0x50] sm:$0xff]  ;;  %v1604_v10 = vld [vmem:[%s2061_s1 + $0x28] sm:$0xff]  ;;  %v2087_v2 = vmov 0  ;;  %s1105_s19 = sadd.f32 0.001, %s2060_s0 }
   0x8   :  { %1418 = vmatpush3.bf16.msra.mxu0 %v1530_v5  ;;  %1456 = vmatpush3.bf16.msra.mxu1 %v1530_v5  ;;  %v1609_v11 = vld [vmem:[%s2061_s1 + $0x20] sm:$0xff]  ;;  %v1616_v12 = vld [vmem:[%s2061_s1 + $0x38] sm:$0xff]  ;;  %v1621_v13 = vld [vmem:[%s2061_s1 + $0x30] sm:$0xff]  ;;  %v1649_v19 = vshrl.u32 %v672_v18, 7  ;;  %v1652_v21 = vand.u32 127, %v672_v18  ;;  %s1532_s0 = smov [#allocation5]  }
   0x9   :  { %1419 = vmatprep.subr.bf16.mxu0 %v1530_v5  ;;  %1449 = vmatprep.subr.bf16.mxu1 %v1530_v5  ;;  %v1628_v14 = vld [vmem:[%s2061_s1 + $0x68] sm:$0xff]  ;;  %v1633_v15 = vld [vmem:[%s2061_s1 + $0x60] sm:$0xff]  ;;  %v1640_v16 = vld [vmem:[%s2061_s1 + $0x78] sm:$0xff]  ;;  %v1106_v18 = vstv %s1105_s19  ;;  %s1294_s20 = sshll.u32 %s1532_s0, 4  ;;  %s1295_s20 = int_to_ptr.vmem [resolvable:$true] %s1294_s20 }
   0xa   :  { %763 = vperm.xlu1 %1468, %v1580_v6   ;;  %758 = vperm.xlu0 %1467, %v1585_v7   ;;  %v1645_v17 = vld [vmem:[%s2061_s1 + $0x70] sm:$0xff]  ;;  %v675_v20 = vadd.s32 16, %v1649_v19  ;;  %v1657_v22 = vld [vmem:[%s2062_s2] ss:$0 sm:$0xff]  ;;  %v676_v23 = vadd.s32 24, %v1649_v19  ;;  %v674_v26 = vadd.s32 8, %v1649_v19  ;;  %vm828_vm4 = vcmp.lt.s32.totalorder %v1652_v21, %v1649_v19  ;;  %p1510_p1 = scmp.lt.s32.totalorder %s1295_s20, %s1295_s20 }
   0xb   :  { %v681_v31 = vadd.s32 64, %v1649_v19  ;;  %v682_v32 = vadd.s32 72, %v1649_v19  ;;  %v684_v34 = vadd.s32 88, %v1649_v19  ;;  %v683_v37 = vadd.s32 80, %v1649_v19  ;;  %s1505_s21 = scalar_lea.vmem %s1295_s20, 128 }
   0xc   :  { %1420 = vmatpush3.bf16.msra.mxu0 %v1530_v5  ;;  %1457 = vmatpush3.bf16.msra.mxu1 %v1530_v5  ;;  %vm830_vm0 = vcmp.lt.s32.totalorder %v1652_v21, %v675_v20  ;;  %vm831_vm8 = vcmp.lt.s32.totalorder %v1652_v21, %v676_v23  ;;  %vm829_vm9 = vcmp.lt.s32.totalorder %v1652_v21, %v674_v26  ;;  %v678_v43 = vadd.s32 40, %v1649_v19  ;;  %p1506_p0 = scmp.ne.s32.totalorder %s1295_s20, %s1505_s21  ;;  %p1511_p2 = scmp.lt.s32.totalorder %s1505_s21, %s1505_s21 }
   0xd   :  { %1421 = vmatprep.subr.bf16.mxu0 %v1530_v5  ;;  %1450 = vmatprep.subr.bf16.mxu1 %v1530_v5  ;;  %v677_v46 = vadd.s32 32, %v1649_v19  ;;  %v680_v49 = vadd.s32 56, %v1649_v19  ;;  %v679_v51 = vadd.s32 48, %v1649_v19  ;;  %v686_v55 = vadd.s32 104, %v1649_v19 }
   0xe   :  { %773 = vperm.xlu1 %1468, %v1592_v8   ;;  %768 = vperm.xlu0 %1467, %v1597_v9   ;;  %v685_v57 = vadd.s32 96, %v1649_v19  ;;  %v688_v61 = vadd.s32 120, %v1649_v19  ;;  %v687_v63 = vadd.s32 112, %v1649_v19  ;;  %1469 = vrcp.f32 %v1106_v18  ;;  %p1512_p3 = por %p1511_p2, %p1510_p1 }
  0x10   :  { %1422 = vmatpush3.bf16.msra.mxu0 %v1530_v5  ;;  %1458 = vmatpush3.bf16.msra.mxu1 %v1530_v5  ;;  %p1513_p4 = pnand %p1512_p3, %p1506_p0 }
  0x11   :  { %1423 = vmatprep.subr.bf16.mxu0 %v1530_v5  ;;  %1451 = vmatprep.subr.bf16.mxu1 %v1530_v5 }
  0x12   :  { %743 = vperm.xlu1 %1468, %v1604_v10   ;;  %738 = vperm.xlu0 %1467, %v1609_v11  }
  0x14   :  { %1424 = vmatpush3.bf16.msra.mxu0 %v1530_v5  ;;  %1459 = vmatpush3.bf16.msra.mxu1 %v1530_v5 }
  0x15   :  { %1425 = vmatprep.subr.bf16.mxu0 %v1530_v5  ;;  %1452 = vmatprep.subr.bf16.mxu1 %v1530_v5 }
  0x16   :  { %753 = vperm.xlu1 %1468, %v1616_v12   ;;  %748 = vperm.xlu0 %1467, %v1621_v13  }
  0x18   :  { %1426 = vmatpush3.bf16.msra.mxu0 %v1530_v5  ;;  %1460 = vmatpush3.bf16.msra.mxu1 %v1530_v5  ;;  %v1470_v19 = vpop.eup %1469 }
  0x19   :  { %1427 = vmatprep.subr.bf16.mxu0 %v1530_v5  ;;  %1453 = vmatprep.subr.bf16.mxu1 %v1530_v5  ;;  %v1806_v20 = vmul.f32 %v1470_v19, %v1556_v0  ;;  %v1848_v30 = vmul.f32 %v1470_v19, %v1592_v8  ;;  %v1890_v40 = vmul.f32 %v1470_v19, %v1640_v16 }
  0x1a   :  { %783 = vperm.xlu1 %1468, %v1628_v14   ;;  %778 = vperm.xlu0 %1467, %v1633_v15  }
  0x1c   :  { %1428 = vmatpush3.bf16.msra.mxu0 %v1530_v5  ;;  %1461 = vmatpush3.bf16.msra.mxu1 %v1530_v5 }
  0x1d   :  { %1429 = vmatprep.subr.bf16.mxu0 %v1530_v5  ;;  %1454 = vmatprep.subr.bf16.mxu1 %v1530_v5 }
  0x1e   :  { %793 = vperm.xlu1 %1468, %v1640_v16   ;;  %788 = vperm.xlu0 %1467, %v1645_v17  }
  0x20   :  { %1430 = vmatpush3.bf16.msra.mxu0 %v1530_v5  ;;  %1462 = vmatpush3.bf16.msra.mxu1 %v1530_v5 }
  0x81   :  { %v729_v24 = vpop.permute.xlu1 %728  ;;  %v719_v25 = vpop.permute.xlu0 %718 }
  0x82   :  { %vm798_vm1 = vcmp.gt.f32.partialorder %v1657_v22, %v729_v24  ;;  %vm814_vm2 = vcmp.eq.f32.partialorder %v1657_v22, %v729_v24  ;;  %vm812_vm3 = vcmp.eq.f32.partialorder %v1657_v22, %v719_v25  ;;  %vm796_vm6 = vcmp.gt.f32.partialorder %v1657_v22, %v719_v25 }
  0x83   :  { %vm846_vm5 = vmand %vm814_vm2, %vm830_vm0  ;;  %v1817_v24 = vmul.f32 %v1470_v19, %v1573_v4 }
  0x84   :  { %vm1668_vm7 = vmor %vm798_vm1, %vm846_vm5  ;;  %vm836_vm5 = vcmp.lt.s32.totalorder %v1652_v21, %v681_v31 }
  0x85   :  { %v734_v28 = vpop.permute.xlu1 %733  ;;  %v724_v29 = vpop.permute.xlu0 %723  ;;  %vm844_vm10 = vmand %vm812_vm3, %vm828_vm4 }
  0x86   :  { %vm799_vm11 = vcmp.gt.f32.partialorder %v1657_v22, %v734_v28  ;;  %vm815_vm12 = vcmp.eq.f32.partialorder %v1657_v22, %v734_v28  ;;  %vm813_vm13 = vcmp.eq.f32.partialorder %v1657_v22, %v724_v29  ;;  %vm1677_vm14 = vmor %vm796_vm6, %vm844_vm10  ;;  %vm797_vm0 = vcmp.gt.f32.partialorder %v1657_v22, %v724_v29 }
  0x87   :  { %vm847_vm15 = vmand %vm815_vm12, %vm831_vm8  ;;  %vm837_vm10 = vcmp.lt.s32.totalorder %v1652_v21, %v682_v32  ;;  %v1842_v28 = vmul.f32 %v1470_v19, %v1597_v9  ;;  %v1845_v29 = vmul.f32 %v1470_v19, %v1585_v7  ;;  %v1853_v32 = vmul.f32 %v1470_v19, %v1580_v6 }
  0x88   :  { %vm1684_vm1 = vmor %vm799_vm11, %vm847_vm15  ;;  %vm839_vm11 = vcmp.lt.s32.totalorder %v1652_v21, %v684_v34  ;;  %vm838_vm15 = vcmp.lt.s32.totalorder %v1652_v21, %v683_v37  ;;  %v1881_v37 = vmul.f32 %v1470_v19, %v1609_v11 }
  0x89   :  { %v764_v35 = vpop.permute.xlu1 %763  ;;  %v759_v36 = vpop.permute.xlu0 %758  ;;  %vm845_vm2 = vmand %vm813_vm13, %vm829_vm9 }
  0x8a   :  { %vm820_vm3 = vcmp.eq.f32.partialorder %v1657_v22, %v759_v36  ;;  %vm861_vm4 = vmor %vm797_vm0, %vm845_vm2  ;;  %vm821_vm6 = vcmp.eq.f32.partialorder %v1657_v22, %v764_v35 }
  0x8b   :  { %vm1382_vm8 = vmpackc.low %vm861_vm4, %vm1677_vm14 }
  0x8c   :  { %1431 = vmatprep.mubr.msk.bf16.mxu0 %vm1382_vm8, %v1531_v38  ;;  %vm1384_vm9 = vmpackc.low %vm1684_vm1, %vm1668_vm7 }
  0x8d   :  { %1432 = vmatmul.mubr.msk.bf16.vlgmr.msra.gmra.mrb[0].mxu0 %vm1384_vm9, %v1531_v38  ;;  %v774_v39 = vpop.permute.xlu1 %773  ;;  %vm1703_vm12 = vmand %vm820_vm3, %vm836_vm5  ;;  %v769_v41 = vpop.permute.xlu0 %768  ;;  %vm804_vm3 = vcmp.gt.f32.partialorder %v1657_v22, %v759_v36  ;;  %vm805_vm5 = vcmp.gt.f32.partialorder %v1657_v22, %v764_v35  ;;  %vm833_vm9 = vcmp.lt.s32.totalorder %v1652_v21, %v678_v43  ;;  %v1878_v36 = vmul.f32 %v1470_v19, %v1621_v13 }
  0x8e   :  { %vm807_vm13 = vcmp.gt.f32.partialorder %v1657_v22, %v774_v39  ;;  %vm823_vm14 = vcmp.eq.f32.partialorder %v1657_v22, %v774_v39  ;;  %vm1710_vm0 = vmand %vm821_vm6, %vm837_vm10  ;;  %vm806_vm1 = vcmp.gt.f32.partialorder %v1657_v22, %v769_v41  ;;  %vm822_vm2 = vcmp.eq.f32.partialorder %v1657_v22, %v769_v41 }
  0x8f   :  { %vm855_vm7 = vmand %vm823_vm14, %vm839_vm11  ;;  %v1887_v39 = vmul.f32 %v1470_v19, %v1633_v15  ;;  %v1893_v41 = vmul.f32 %v1470_v19, %v1645_v17  ;;  %v1905_v15 = vmul.f32 %v1470_v19, %v1628_v14 }
  0x90   :  { %vm1718_vm4 = vmor %vm807_vm13, %vm855_vm7  ;;  %vm832_vm7 = vcmp.lt.s32.totalorder %v1652_v21, %v677_v46 }
  0x91   :  { %vm854_vm8 = vmand %vm822_vm2, %vm838_vm15  ;;  %v744_v45 = vpop.permute.xlu1 %743  ;;  %v739_v48 = vpop.permute.xlu0 %738 }
  0x92   :  { %vm1724_vm6 = vmor %vm806_vm1, %vm854_vm8  ;;  %vm817_vm11 = vcmp.eq.f32.partialorder %v1657_v22, %v744_v45  ;;  %vm801_vm14 = vcmp.gt.f32.partialorder %v1657_v22, %v744_v45  ;;  %vm816_vm1 = vcmp.eq.f32.partialorder %v1657_v22, %v739_v48  ;;  %vm800_vm2 = vcmp.gt.f32.partialorder %v1657_v22, %v739_v48 }
  0x93   :  { %vm868_vm10 = vmor %vm804_vm3, %vm1703_vm12 }
  0x94   :  { %vm869_vm13 = vmor %vm805_vm5, %vm1710_vm0  ;;  %vm835_vm5 = vcmp.lt.s32.totalorder %v1652_v21, %v680_v49 }
  0x95   :  { %vm1390_vm15 = vmpackc.low %vm869_vm13, %vm868_vm10  ;;  %v754_v50 = vpop.permute.xlu1 %753  ;;  %v749_v52 = vpop.permute.xlu0 %748  ;;  %vm834_vm13 = vcmp.lt.s32.totalorder %v1652_v21, %v679_v51 }
  0x96   :  { %1439 = vmatprep.mubr.msk.bf16.mxu1 %vm1390_vm15, %v1531_v38  ;;  %vm849_vm12 = vmand %vm817_vm11, %vm833_vm9  ;;  %vm819_vm8 = vcmp.eq.f32.partialorder %v1657_v22, %v754_v50  ;;  %vm803_vm9 = vcmp.gt.f32.partialorder %v1657_v22, %v754_v50 }
  0x97   :  { %vm1741_vm3 = vmor %vm801_vm14, %vm849_vm12  ;;  %vm818_vm14 = vcmp.eq.f32.partialorder %v1657_v22, %v749_v52 }
  0x98   :  { %vm848_vm0 = vmand %vm816_vm1, %vm832_vm7  ;;  %vm802_vm7 = vcmp.gt.f32.partialorder %v1657_v22, %v749_v52 }
  0x99   :  { %vm1747_vm10 = vmor %vm800_vm2, %vm848_vm0  ;;  %v784_v56 = vpop.permute.xlu1 %783  ;;  %v779_v58 = vpop.permute.xlu0 %778  ;;  %vm841_vm2 = vcmp.lt.s32.totalorder %v1652_v21, %v686_v55 }
  0x9a   :  { %vm1392_vm11 = vmpackc.low %vm1718_vm4, %vm1724_vm6  ;;  %vm825_vm4 = vcmp.eq.f32.partialorder %v1657_v22, %v784_v56  ;;  %vm809_vm0 = vcmp.gt.f32.partialorder %v1657_v22, %v784_v56 }
  0x9b   :  { %1440 = vmatmul.mubr.msk.bf16.vlgmr.msra.gmra.mrb[0].mxu1 %vm1392_vm11, %v1531_v38  ;;  %vm851_vm15 = vmand %vm819_vm8, %vm835_vm5  ;;  %vm840_vm8 = vcmp.lt.s32.totalorder %v1652_v21, %v685_v57 }
  0x9c   :  { %vm1762_vm1 = vmor %vm803_vm9, %vm851_vm15  ;;  %vm824_vm9 = vcmp.eq.f32.partialorder %v1657_v22, %v779_v58 }
  0x9d   :  { %vm850_vm12 = vmand %vm818_vm14, %vm834_vm13  ;;  %v794_v62 = vpop.permute.xlu1 %793  ;;  %vm808_vm13 = vcmp.gt.f32.partialorder %v1657_v22, %v779_v58  ;;  %v789_v5 = vpop.permute.xlu0 %788 }
  0x9e   :  { %vm1768_vm6 = vmor %vm802_vm7, %vm850_vm12  ;;  %vm811_vm12 = vcmp.gt.f32.partialorder %v1657_v22, %v794_v62 }
  0x9f   :  { %vm1386_vm5 = vmpackc.low %vm1741_vm3, %vm1747_vm10  ;;  %vm843_vm3 = vcmp.lt.s32.totalorder %v1652_v21, %v688_v61  ;;  %vm827_vm10 = vcmp.eq.f32.partialorder %v1657_v22, %v794_v62 }
  0xa0   :  { %1435 = vmatprep.mubr.msk.bf16.mxu0 %vm1386_vm5, %v1531_v38  ;;  %vm857_vm11 = vmand %vm825_vm4, %vm841_vm2  ;;  %vm842_vm4 = vcmp.lt.s32.totalorder %v1652_v21, %v687_v63  ;;  %v1809_v21 = vmul.f32 %v1470_v19, %v1561_v1 }
  0xa1   :  { %vm1783_vm14 = vmor %vm809_vm0, %vm857_vm11  ;;  %vm826_vm0 = vcmp.eq.f32.partialorder %v1657_v22, %v789_v5 }
  0xa2   :  { %v2088_v2 = vsel %vm1783_vm14, 4294967295, %v2087_v2  ;;  %vm856_vm15 = vmand %vm824_vm9, %vm840_vm8  ;;  %vm810_vm8 = vcmp.gt.f32.partialorder %v1657_v22, %v789_v5  ;;  %v1812_v22 = vmul.f32 %v1470_v19, %v1568_v3 }
  0xa3   :  { %vm872_vm7 = vmor %vm808_vm13, %vm856_vm15  ;;  %vm2089_vm13 = vnez %v2088_v2 }
  0xa4   :  { %vm1388_vm2 = vmpackc.low %vm1762_vm1, %vm1768_vm6 }
  0xa5   :  { %1436 = vmatmul.mubr.msk.bf16.gmra.mrb[4].mxu0 %vm1388_vm2, %v1531_v38  ;;  %vm859_vm5 = vmand %vm827_vm10, %vm843_vm3 }
  0xa6   :  { %vm875_vm9 = vmor %vm811_vm12, %vm859_vm5 }
  0xa7   :  { %vm858_vm11 = vmand %vm826_vm0, %vm842_vm4  ;;  %vm1140_vm0 = vcmask 7168  }
  0xa8   :  { %vm874_vm14 = vmor %vm810_vm8, %vm858_vm11 }
  0xa9   :  { %vm1394_vm15 = vmpackc.low %vm2089_vm13, %vm872_vm7 }
  0xaa   :  { %1443 = vmatprep.mubr.msk.bf16.mxu1 %vm1394_vm15, %v1531_v38  ;;  %vm1396_vm1 = vmpackc.low %vm875_vm9, %vm874_vm14 }
  0xab   :  { %1444 = vmatmul.mubr.msk.bf16.gmra.mrb[4].mxu1 %vm1396_vm1, %v1531_v38  ;;  %v1884_v38 = vmul.f32 %v1470_v19, %v1616_v12  ;;  %v1902_v12 = vmul.f32 %v1470_v19, %v1604_v10 }
 0x160   :  { %v1814_v23 = vpop.f32.mrb[0].mxu0 }
 0x161   :  { %vm1091_vm6 = vcmp.lt.f32.partialorder %v1814_v23, 4.0  ;;  %v1820_v25 = vpop.f32.mrb[1].mxu0 }
 0x162   :  { %v1126_v0 = vsel %vm1091_vm6, %v1806_v20, -1e+30  ;;  %vm1089_vm14 = vcmp.lt.f32.partialorder %v1820_v25, 4.0  ;;  %v1826_v1 = vpop.f32.mrb[2].mxu0 }
 0x163   :  { %v1124_v3 = vsel %vm1089_vm14, %v1809_v21, -1e+30  ;;  %vm1092_vm3 = vcmp.lt.f32.partialorder %v1826_v1, 4.0  ;;  %v1832_v4 = vpop.f32.mrb[3].mxu0  ;;  %v1143_v13 = vsel %vm1140_vm0, %v1126_v0, -inf }
 0x164   :  { %v1127_v26 = vsel %vm1092_vm3, %v1812_v22, -1e+30  ;;  %vm1090_vm10 = vcmp.lt.f32.partialorder %v1832_v4, 4.0  ;;  %v1141_v16 = vsel %vm1140_vm0, %v1124_v3, -inf }
 0x165   :  { %v1125_v27 = vsel %vm1090_vm10, %v1817_v24, -1e+30  ;;  %v1144_v43 = vsel %vm1140_vm0, %v1127_v26, -inf }
 0x166   :  { %v1142_v45 = vsel %vm1140_vm0, %v1125_v27, -inf }
 0x16e   :  { %v1850_v31 = vpop.f32.mrb[0].mxu1 }
 0x16f   :  { %vm1099_vm7 = vcmp.lt.f32.partialorder %v1850_v31, 4.0  ;;  %v1856_v33 = vpop.f32.mrb[1].mxu1 }
 0x170   :  { %v1134_v9 = vsel %vm1099_vm7, %v1842_v28, -1e+30  ;;  %vm1097_vm12 = vcmp.lt.f32.partialorder %v1856_v33, 4.0  ;;  %v1862_v7 = vpop.f32.mrb[2].mxu1 }
 0x171   :  { %v1132_v8 = vsel %vm1097_vm12, %v1845_v29, -1e+30  ;;  %vm1100_vm2 = vcmp.lt.f32.partialorder %v1862_v7, 4.0  ;;  %v1868_v6 = vpop.f32.mrb[3].mxu1  ;;  %v1157_v50 = vsel %vm1140_vm0, %v1134_v9, -inf }
 0x172   :  { %v1135_v34 = vsel %vm1100_vm2, %v1848_v30, -1e+30  ;;  %vm1098_vm4 = vcmp.lt.f32.partialorder %v1868_v6, 4.0  ;;  %v1153_v54 = vsel %vm1140_vm0, %v1132_v8, -inf }
 0x173   :  { %v1133_v35 = vsel %vm1098_vm4, %v1853_v32, -1e+30  ;;  %v1159_v59 = vsel %vm1140_vm0, %v1135_v34, -inf }
 0x174   :  { %v1155_v63 = vsel %vm1140_vm0, %v1133_v35, -inf }
 0x178   :  { %v1895_v42 = vpop.f32.mrb[4].mxu0 }
 0x179   :  { %vm1095_vm5 = vcmp.lt.f32.partialorder %v1895_v42, 4.0  ;;  %v1899_v11 = vpop.f32.mrb[5].mxu0 }
 0x17a   :  { %v1130_v17 = vsel %vm1095_vm5, %v1878_v36, -1e+30  ;;  %vm1093_vm8 = vcmp.lt.f32.partialorder %v1899_v11, 4.0  ;;  %v1913_v44 = vpop.f32.mrb[6].mxu0 }
 0x17b   :  { %v1149_v10 = vsel %vm1140_vm0, %v1130_v17, -inf  ;;  %v1128_v14 = vsel %vm1093_vm8, %v1881_v37, -1e+30  ;;  %vm1096_vm9 = vcmp.lt.f32.partialorder %v1913_v44, 4.0  ;;  %v1921_v46 = vpop.f32.mrb[7].mxu0 }
 0x17c   :  { %v1150_v47 = vmax.f32 %v1143_v13, %v1149_v10  ;;  %v1145_v48 = vsel %vm1140_vm0, %v1128_v14, -inf  ;;  %v1131_v49 = vsel %vm1096_vm9, %v1884_v38, -1e+30  ;;  %vm1094_vm11 = vcmp.lt.f32.partialorder %v1921_v46, 4.0 }
 0x17d   :  { %v1146_v51 = vmax.f32 %v1141_v16, %v1145_v48  ;;  %v1151_v52 = vsel %vm1140_vm0, %v1131_v49, -inf  ;;  %v1129_v53 = vsel %vm1094_vm11, %v1902_v12, -1e+30 }
 0x17e   :  { %v1152_v55 = vmax.f32 %v1144_v43, %v1151_v52  ;;  %v1147_v56 = vsel %vm1140_vm0, %v1129_v53, -inf  ;;  %v1935_v57 = vpop.f32.mrb[4].mxu1  ;;  %v1158_v58 = vmax.f32 %v1150_v47, %v1157_v50 }
 0x17f   :  { %v1148_v60 = vmax.f32 %v1142_v45, %v1147_v56  ;;  %vm2064_vm13 = vcmp.lt.f32.partialorder %v1935_v57, 4.0  ;;  %v1939_v61 = vpop.f32.mrb[5].mxu1  ;;  %v1154_v62 = vmax.f32 %v1146_v51, %v1153_v54 }
 0x180   :  { %v1138_v2 = vsel %vm2064_vm13, %v1893_v41, -1e+30  ;;  %vm1101_vm15 = vcmp.lt.f32.partialorder %v1939_v61, 4.0  ;;  %v1946_v5 = vpop.f32.mrb[6].mxu1  ;;  %v1160_v18 = vmax.f32 %v1152_v55, %v1159_v59 }
 0x181   :  { %v1165_v19 = vsel %vm1140_vm0, %v1138_v2, -inf  ;;  %v1136_v0 = vsel %vm1101_vm15, %v1887_v39, -1e+30  ;;  %vm1104_vm1 = vcmp.lt.f32.partialorder %v1946_v5, 4.0  ;;  %v1953_v3 = vpop.f32.mrb[7].mxu1  ;;  %v1156_v26 = vmax.f32 %v1148_v60, %v1155_v63 }
 0x182   :  { %v1166_v27 = vmax.f32 %v1158_v58, %v1165_v19  ;;  %v1161_v9 = vsel %vm1140_vm0, %v1136_v0, -inf  ;;  %v1139_v8 = vsel %vm1104_vm1, %v1890_v40, -1e+30  ;;  %vm1102_vm13 = vcmp.lt.f32.partialorder %v1953_v3, 4.0 }
 0x183   :  { %v1162_v34 = vmax.f32 %v1154_v62, %v1161_v9  ;;  %v1167_v35 = vsel %vm1140_vm0, %v1139_v8, -inf  ;;  %v1137_v13 = vsel %vm1102_vm13, %v1905_v15, -1e+30 }
 0x184   :  { %v1168_v16 = vmax.f32 %v1160_v18, %v1167_v35  ;;  %v1163_v43 = vsel %vm1140_vm0, %v1137_v13, -inf }
 0x185   :  { %v1164_v17 = vmax.f32 %v1156_v26, %v1163_v43 }
 0x186   :  { %v1170_v45 = vmax.f32 %v1166_v27, %v1168_v16 }
 0x187   :  { %v1169_v10 = vmax.f32 %v1162_v34, %v1164_v17 }
 0x189   :  { %v1171_v14 = vmax.f32 %v1169_v10, %v1170_v45 }
 0x18b   :  { %v1172_v47 = vrot.slane %v1171_v14, 4 }
 0x18d   :  { %v1173_v48 = vmax.f32 %v1171_v14, %v1172_v47 }
 0x18f   :  { %v1174_v49 = vrot.slane %v1173_v48, 2 }
 0x191   :  { %v1175_v50 = vmax.f32 %v1173_v48, %v1174_v49 }
 0x193   :  { %v1176_v51 = vrot.slane %v1175_v50, 1 }
 0x195   :  { %v1965_v52 = vmax.f32 %v1175_v50, %v1176_v51 }
 0x197   :  { %v1178_v53 = vsub.f32 %v1809_v21, %v1965_v52  ;;  %v1179_v54 = vsub.f32 %v1817_v24, %v1965_v52  ;;  %v1180_v55 = vsub.f32 %v1806_v20, %v1965_v52  ;;  %v1181_v56 = vsub.f32 %v1812_v22, %v1965_v52 }
 0x198   :  { %v1182_v58 = vsub.f32 %v1881_v37, %v1965_v52  ;;  %v1183_v59 = vsub.f32 %v1902_v12, %v1965_v52  ;;  %v1184_v60 = vsub.f32 %v1878_v36, %v1965_v52  ;;  %v1185_v24 = vsub.f32 %v1884_v38, %v1965_v52 }
 0x199   :  { %v1194_v62 = vmul.f32 1.442695, %v1178_v53  ;;  %v1196_v21 = vmul.f32 1.442695, %v1179_v54  ;;  %v1198_v63 = vmul.f32 1.442695, %v1180_v55  ;;  %v1186_v20 = vsub.f32 %v1845_v29, %v1965_v52 }
 0x19a   :  { %v1200_v2 = vmul.f32 1.442695, %v1181_v56  ;;  %v1202_v22 = vmul.f32 1.442695, %v1182_v58  ;;  %v1187_v37 = vsub.f32 %v1853_v32, %v1965_v52  ;;  %v1204_v12 = vmul.f32 1.442695, %v1183_v59 }
 0x19b   :  { %1471 = vpow2.f32 %v1194_v62  ;;  %v1188_v36 = vsub.f32 %v1842_v28, %v1965_v52  ;;  %v1206_v18 = vmul.f32 1.442695, %v1184_v60  ;;  %v1189_v19 = vsub.f32 %v1848_v30, %v1965_v52 }
 0x19c   :  { %1473 = vpow2.f32 %v1196_v21  ;;  %v1208_v38 = vmul.f32 1.442695, %v1185_v24  ;;  %v1190_v29 = vsub.f32 %v1887_v39, %v1965_v52  ;;  %v1210_v0 = vmul.f32 1.442695, %v1186_v20 }
 0x19d   :  { %1475 = vpow2.f32 %v1198_v63  ;;  %v1212_v26 = vmul.f32 1.442695, %v1187_v37  ;;  %v1192_v32 = vsub.f32 %v1893_v41, %v1965_v52  ;;  %v1214_v27 = vmul.f32 1.442695, %v1188_v36 }
 0x19e   :  { %1477 = vpow2.f32 %v1200_v2  ;;  %v1193_v28 = vsub.f32 %v1890_v40, %v1965_v52  ;;  %v1216_v9 = vmul.f32 1.442695, %v1189_v19  ;;  %v1218_v30 = vmul.f32 1.442695, %v1190_v29 }
 0x19f   :  { %1479 = vpow2.f32 %v1202_v22  ;;  %v1222_v39 = vmul.f32 1.442695, %v1192_v32  ;;  %v1191_v17 = vsub.f32 %v1905_v15, %v1965_v52 }
 0x1a0   :  { %1481 = vpow2.f32 %v1204_v12  ;;  %v1224_v35 = vmul.f32 1.442695, %v1193_v28 }
 0x1a1   :  { %1483 = vpow2.f32 %v1206_v18  ;;  %v1220_v23 = vmul.f32 1.442695, %v1191_v17 }
 0x1a2   :  { %1485 = vpow2.f32 %v1208_v38 }
 0x1a3   :  { %1487 = vpow2.f32 %v1210_v0 }
 0x1a4   :  { %1489 = vpow2.f32 %v1212_v26 }
 0x1a5   :  { %v1472_v8 = vpop.eup %1471  ;;  %1491 = vpow2.f32 %v1214_v27 }
 0x1a6   :  { %v1474_v34 = vpop.eup %1473  ;;  %1493 = vpow2.f32 %v1216_v9  ;;  %v1226_v13 = vsel %vm1089_vm14, %v1472_v8, 0.0 }
 0x1a7   :  { %v1476_v41 = vpop.eup %1475  ;;  %1495 = vpow2.f32 %v1218_v30  ;;  %v1227_v16 = vsel %vm1090_vm10, %v1474_v34, 0.0  ;;  %v1242_v40 = vsel %vm1140_vm0, %v1226_v13, 0.0 }
 0x1a8   :  { %v1478_v43 = vpop.eup %1477  ;;  %v1228_v45 = vsel %vm1091_vm6, %v1476_v41, 0.0  ;;  %v1243_v10 = vsel %vm1140_vm0, %v1227_v16, 0.0  ;;  %1497 = vpow2.f32 %v1222_v39  ;;  %vm2090_vm6 = vcmp.lt.f32.partialorder %v1935_v57, 4.0 }
 0x1a9   :  { %v1480_v14 = vpop.eup %1479  ;;  %v1229_v25 = vsel %vm1092_vm3, %v1478_v43, 0.0  ;;  %v1244_v47 = vadd.f32 %v1243_v10, %v1242_v40  ;;  %1499 = vpow2.f32 %v1224_v35  ;;  %v1245_v49 = vsel %vm1140_vm0, %v1228_v45, 0.0 }
 0x1aa   :  { %v1482_v48 = vpop.eup %1481  ;;  %v1230_v4 = vsel %vm1093_vm8, %v1480_v14, 0.0  ;;  %v1247_v54 = vsel %vm1140_vm0, %v1229_v25, 0.0  ;;  %1501 = vpow2.f32 %v1220_v23 }
 0x1ab   :  { %v1484_v50 = vpop.eup %1483  ;;  %v1246_v15 = vadd.f32 %v1245_v49, %v1244_v47  ;;  %v1231_v1 = vsel %vm1094_vm11, %v1482_v48, 0.0  ;;  %v1249_v60 = vsel %vm1140_vm0, %v1230_v4, 0.0 }
 0x1ac   :  { %v1486_v51 = vpop.eup %1485  ;;  %v1232_v53 = vsel %vm1095_vm5, %v1484_v50, 0.0  ;;  %v1251_v44 = vsel %vm1140_vm0, %v1231_v1, 0.0 }
 0x1ad   :  { %v1488_v55 = vpop.eup %1487  ;;  %v1233_v56 = vsel %vm1096_vm9, %v1486_v51, 0.0  ;;  %v1248_v11 = vadd.f32 %v1247_v54, %v1246_v15  ;;  %v1253_v22 = vsel %vm1140_vm0, %v1232_v53, 0.0 }
 0x1ae   :  { %v1490_v58 = vpop.eup %1489  ;;  %v1234_v59 = vsel %vm1097_vm12, %v1488_v55, 0.0  ;;  %v1255_v31 = vsel %vm1140_vm0, %v1233_v56, 0.0 }
 0x1af   :  { %v1492_v62 = vpop.eup %1491  ;;  %v1235_v42 = vsel %vm1098_vm4, %v1490_v58, 0.0  ;;  %v1250_v21 = vadd.f32 %v1249_v60, %v1248_v11  ;;  %v1257_v7 = vsel %vm1140_vm0, %v1234_v59, 0.0 }
 0x1b0   :  { %v1494_v63 = vpop.eup %1493  ;;  %v1236_v46 = vsel %vm1099_vm7, %v1492_v62, 0.0  ;;  %v1259_v61 = vsel %vm1140_vm0, %v1235_v42, 0.0 }
 0x1b1   :  { %v1496_v24 = vpop.eup %1495  ;;  %v1237_v2 = vsel %vm1100_vm2, %v1494_v63, 0.0  ;;  %v1252_v33 = vadd.f32 %v1251_v44, %v1250_v21  ;;  %v1261_v26 = vsel %vm1140_vm0, %v1236_v46, 0.0 }
 0x1b2   :  { %v1238_v20 = vsel %vm1101_vm15, %v1496_v24, 0.0  ;;  %v1498_v6 = vpop.eup %1497  ;;  %v1263_v27 = vsel %vm1140_vm0, %v1237_v2, 0.0 }
 0x1b3   :  { %v1254_v37 = vadd.f32 %v1253_v22, %v1252_v33  ;;  %v1500_v12 = vpop.eup %1499  ;;  %v1240_v36 = vsel %vm2090_vm6, %v1498_v6, 0.0  ;;  %v1265_v5 = vsel %vm1140_vm0, %v1238_v20, 0.0 }
 0x1b4   :  { %v1241_v18 = vsel %vm1104_vm1, %v1500_v12, 0.0  ;;  %v1502_v0 = vpop.eup %1501  ;;  %v1269_v39 = vsel %vm1140_vm0, %v1240_v36, 0.0 }
 0x1b5   :  { %v1256_v19 = vadd.f32 %v1255_v31, %v1254_v37  ;;  %v1239_v57 = vsel %vm1102_vm13, %v1502_v0, 0.0  ;;  %v1271_v35 = vsel %vm1140_vm0, %v1241_v18, 0.0 }
 0x1b6   :  { %v1267_v30 = vsel %vm1140_vm0, %v1239_v57, 0.0 }
 0x1b7   :  { %v1258_v38 = vadd.f32 %v1257_v7, %v1256_v19 }
 0x1b9   :  { %v1260_v29 = vadd.f32 %v1259_v61, %v1258_v38 }
 0x1bb   :  { %v1262_v32 = vadd.f32 %v1261_v26, %v1260_v29 }
 0x1bd   :  { %v1264_v28 = vadd.f32 %v1263_v27, %v1262_v32 }
 0x1bf   :  { %v1266_v9 = vadd.f32 %v1265_v5, %v1264_v28 }
 0x1c1   :  { %v1268_v8 = vadd.f32 %v1267_v30, %v1266_v9 }
 0x1c3   :  { %v1270_v34 = vadd.f32 %v1269_v39, %v1268_v8 }
 0x1c5   :  { %v1272_v13 = vadd.f32 %v1271_v35, %v1270_v34 }
 0x1c7   :  { %v1273_v41 = vrot.slane %v1272_v13, 4 }
 0x1c9   :  { %v1274_v16 = vadd.f32 %v1273_v41, %v1272_v13 }
 0x1cb   :  { %v1275_v40 = vrot.slane %v1274_v16, 2 }
 0x1cd   :  { %v1276_v43 = vadd.f32 %v1275_v40, %v1274_v16 }
 0x1cf   :  { %v1277_v17 = vrot.slane %v1276_v43, 1 }
 0x1d1   :  { %v1278_v3 = vadd.f32 %v1277_v17, %v1276_v43 }
 0x1d3   :  { %1503 = vlog2.f32 %v1278_v3 }
 0x1dd   :  { %v1504_v45 = vpop.eup %1503 }
 0x1de   :  { %v1280_v10 = vmul.f32 0.6931472, %v1504_v45 }
 0x1e0   :  { %v1281_v14 = vadd.f32 %v1280_v10, %v1965_v52 }
 0x1e2   :  { %1284 = vperm.xlu0 %1467, %v1281_v14  }
 0x261   :  { %v1285_v25 = vpop.permute.xlu0 %1284 }
 0x262   :  { %1287 = vst [vmem:[#allocation5] sm:$0xff] %v1285_v25 }
 0x263   :  { %1516 = shalt.err (!%p1513_p4)
}
 0x264   :  { %s1517_s24 = scalar_lea.hbm %s2063_s3, 128 }
 0x265   :  { %p1518_p5 = scmp.ne.s32.totalorder %s2063_s3, %s1517_s24  ;;  %p1521_p6 = scmp.lt.u32.totalorder %s1517_s24, %s2063_s3 }
 0x267   :  { %p1523_p7 = pnand %p1521_p6, %p1518_p5 }
 0x269   :  { %1526 = shalt.err (!%p1523_p7)
}
 0x26a   :  { %1297 = dma.vmem_to_hbm [thread:$0]  %s1295_s20, 128, %s2063_s3, [#allocation6]  }
 0x26b   :  { %1527 = dma.done.wait [#allocation6], 128  }
 0x26c   :  { %1528 = vsyncadd [#allocation6], 4294967168 }
 0x26d   :  { %1301 = vsyncpa [#allocation6], 1 }

</bundles_post_ra>
